<compile_context>
chip_gen: v7x
topology: tpu7x:2x2x1
jax: 0.10.0
libtpu: 0.0.40
codegen_flags: <defaults>
</compile_context>

<pallas_src>
import math
import functools

import jax
import jax.numpy as jnp
from jax import lax
from jax.experimental import pallas as pl
from jax.experimental.pallas import tpu as pltpu


def _split_group_cosine_kernel(scale_ref, x_ref, wt_ref, o_ref):
    # Recompute the per-row L2 normalization each step: ~1/tn of the MXU work,
    # executed on VPU/EUP slots, and it removes any cross-step scratch
    # dependency so both grid axes can be "parallel".
    x = x_ref[...].astype(jnp.float32)
    ssq = jnp.sum(x * x, axis=1, keepdims=True)
    inv = lax.rsqrt(jnp.maximum(ssq, 1e-24))          # == 1 / max(||x||, 1e-12)
    xn = (x * inv).astype(wt_ref.dtype)

    # (tb, D) x (D, tn) -> (tb, tn): MXU-native layout, f32 accumulation.
    acc = lax.dot_general(
        xn,
        wt_ref[...],
        dimension_numbers=(((1,), (0,)), ((), ())),
        preferred_element_type=jnp.float32,
    )
    # scale already contains sigma / s_branch per output column (0 in padding).
    o_ref[...] = (acc * scale_ref[...]).astype(o_ref.dtype)


def _round_up(n, m):
    return ((n + m - 1) // m) * m


def _pick_tile(dim, preferred, align):
    """Return (tile, padded_dim): an `align`-multiple tile <= preferred.

    Pads the dimension to a tile multiple instead of silently falling back to
    a single full-dim block (which could blow VMEM for large class counts).
    """
    pref = max(align, (preferred // align) * align)
    if dim <= pref:
        t = _round_up(dim, align)
        return t, t
    t = pref
    while t >= align:
        if dim % t == 0:
            return t, dim
        t -= align
    return pref, _round_up(dim, pref)


def prepare_split_group_cosine_params(w1, w2, sigma, *, compute_dtype=jnp.bfloat16):
    """One-time parameter prep (hoisted out of the forward path).

    Returns:
      wt        : (D, Np) compute_dtype  -- concat([w1, w2], axis=0).T padded
                  to a 128-lane multiple (padding columns are zero).
      col_scale : (1, Np) float32        -- sigma / s_branch per output column
                  (zero in the padding).
    """
    o1, _ = w1.shape
    o2 = w2.shape[0]
    n = o1 + o2

    w1f = w1.astype(jnp.float32)
    w2f = w2.astype(jnp.float32)
    s1 = jnp.sqrt(jnp.mean(jnp.sum(w1f * w1f, axis=1)))
    s2 = jnp.sqrt(jnp.mean(jnp.sum(w2f * w2f, axis=1)))
    sig = jnp.asarray(sigma, jnp.float32).reshape(())

    col_scale = jnp.concatenate(
        [jnp.full((1, o1), sig / s1, jnp.float32),
         jnp.full((1, o2), sig / s2, jnp.float32)],
        axis=1,
    )
    wt = jnp.concatenate([w1f, w2f], axis=0).T            # (D, N)

    n_pad = _round_up(n, 128)
    if n_pad != n:
        wt = jnp.pad(wt, ((0, 0), (0, n_pad - n)))
        col_scale = jnp.pad(col_scale, ((0, 0), (0, n_pad - n)))
    return wt.astype(compute_dtype), col_scale


@functools.partial(jax.jit, static_argnames=("n_out", "tb_pref", "tn_pref"))
def split_group_cosine_forward(x, wt, col_scale, *, n_out, tb_pref=256, tn_pref=512):
    b, d = x.shape
    d_w, n_pad = wt.shape
    assert d_w == d and col_scale.shape == (1, n_pad)
    compute_dtype = wt.dtype
    out_dtype = x.dtype

    # Sublane packing of the matmul operand dtype: 8 f32 / 16 bf16 / 32 i8.
    sub_align = 32 // jnp.dtype(compute_dtype).itemsize
    tb, b_pad = _pick_tile(b, tb_pref, sub_align)
    tn, n_pad2 = _pick_tile(n_pad, tn_pref, 128)   # n_pad already a 128 multiple
    assert n_pad2 == n_pad

    x_c = x.astype(compute_dtype)
    if b_pad != b:
        x_c = jnp.pad(x_c, ((0, b_pad - b), (0, 0)))   # zero rows -> zero output

    # Column tiles OUTER, batch tiles inner: each (D, tn) weight tile is
    # fetched from HBM exactly once per forward.
    grid = (n_pad // tn, b_pad // tb)

    out = pl.pallas_call(
        _split_group_cosine_kernel,
        out_shape=jax.ShapeDtypeStruct((b_pad, n_pad), out_dtype),
        grid_spec=pltpu.PrefetchScalarGridSpec(
            num_scalar_prefetch=0,
            grid=grid,
            in_specs=[
                pl.BlockSpec((1, tn), lambda j, i: (0, j)),   # per-column scale
                pl.BlockSpec((tb, d), lambda j, i: (i, 0)),   # x tile (compute dtype)
                pl.BlockSpec((d, tn), lambda j, i: (0, j)),   # (D, N) weight tile
            ],
            out_specs=pl.BlockSpec((tb, tn), lambda j, i: (i, j)),
        ),
        compiler_params=pltpu.CompilerParams(
            # No cross-step state -> both axes independent; v7x megacore can
            # shard the long class axis even when there is one batch tile.
            dimension_semantics=("parallel", "parallel"),
            # > v5e's 16 MiB scoped default, <= ~48 MiB for v7x's 64 MiB VMEM.
            vmem_limit_bytes=48 * 1024 * 1024,
        ),
    )(col_scale, x_c, wt)
    return out[:b, :n_out]


def _reference(x, w1, w2, sigma):
    eps = 1e-12
    xn = x / jnp.maximum(jnp.linalg.norm(x, axis=1, keepdims=True), eps)

    def branch(w):
        s = jnp.sqrt(jnp.mean(jnp.sum(w * w, axis=1)))
        return xn @ (w / s).T

    return sigma[0] * jnp.concatenate([branch(w1), branch(w2)], axis=1)


if __name__ == "__main__":
    # Small deterministic setup consistent with the module __init__.
    B, in_features, out1, out2 = 16, 64, 192, 320
    n_out = out1 + out2

    key = jax.random.PRNGKey(0)
    kx, kw1, kw2 = jax.random.split(key, 3)

    stdv = 1.0 / math.sqrt(in_features)
    w1 = jax.random.uniform(kw1, (out1, in_features), jnp.float32, -stdv, stdv)
    w2 = jax.random.uniform(kw2, (out2, in_features), jnp.float32, -stdv, stdv)
    sigma = jnp.ones((1,), jnp.float32)            # self.sigma.data.fill_(1)
    x = jax.random.normal(kx, (B, in_features), jnp.float32)

    ref = _reference(x, w1, w2, sigma)

    # Exact-math path (f32 MXU operands): tight check against module semantics.
    # Small tile prefs so the (column, batch) grid is exercised: grid = (4, 2).
    wt32, cs32 = prepare_split_group_cosine_params(
        w1, w2, sigma, compute_dtype=jnp.float32)
    out32 = jax.block_until_ready(
        split_group_cosine_forward(x, wt32, cs32, n_out=n_out,
                                   tb_pref=8, tn_pref=128))
    assert out32.shape == (B, n_out)
    assert jnp.allclose(out32, ref, atol=1e-4, rtol=1e-4), "f32 path mismatch"

    # Production default: bf16 MXU operands, f32 accumulation (grid = (4, 1)).
    wtbf, csbf = prepare_split_group_cosine_params(w1, w2, sigma)
    outbf = jax.block_until_ready(
        split_group_cosine_forward(x, wtbf, csbf, n_out=n_out,
                                   tb_pref=16, tn_pref=128))
    assert outbf.shape == (B, n_out)
    assert jnp.allclose(outbf, ref, atol=2e-2, rtol=2e-2), "bf16 path mismatch"

    print("KERNEL_OK")
</pallas_src>

<mosaic_0001>
module attributes {stable_mosaic.version = 11 : i64} {
  func.func @_split_group_cosine_kernel(%arg0: i32, %arg1: i32, %arg2: memref<1x128xf32, #tpu.memory_space<vmem>>, %arg3: memref<8x64xf32, #tpu.memory_space<vmem>>, %arg4: memref<64x128xf32, #tpu.memory_space<vmem>>, %arg5: memref<8x128xf32, #tpu.memory_space<vmem>>) attributes {dimension_semantics = [#tpu.dimension_semantics<parallel>, #tpu.dimension_semantics<parallel>], iteration_bounds = array<i64: 4, 2>, scalar_prefetch = 0 : i64, scratch_operands = 0 : i64, tpu.core_type = #tpu.core_type<tc>, window_params = [{transform_indices = @transform_0, window_bounds = array<i64: 1, 128>}, {transform_indices = @transform_1, window_bounds = array<i64: 8, 64>}, {transform_indices = @transform_2, window_bounds = array<i64: 64, 128>}, {transform_indices = @transform_3, window_bounds = array<i64: 8, 128>}]} {
    %c0 = arith.constant 0 : index
    %c0_0 = arith.constant 0 : index
    %0 = vector.load %arg3[%c0, %c0_0] : memref<8x64xf32, #tpu.memory_space<vmem>>, vector<8x64xf32>
    %1 = arith.mulf %0, %0 : vector<8x64xf32>
    %cst = arith.constant dense<0.000000e+00> : vector<8xf32>
    %2 = vector.multi_reduction <add>, %1, %cst [1] : vector<8x64xf32> to vector<8xf32>
    %3 = vector.shape_cast %2 : vector<8xf32> to vector<8x1xf32>
    %cst_1 = arith.constant 1.000000e-24 : f32
    %4 = vector.broadcast %cst_1 : f32 to vector<8x1xf32>
    %5 = arith.maximumf %3, %4 : vector<8x1xf32>
    %6 = math.rsqrt %5 : vector<8x1xf32>
    %7 = vector.broadcast %6 : vector<8x1xf32> to vector<8x64xf32>
    %8 = arith.mulf %0, %7 : vector<8x64xf32>
    %c0_2 = arith.constant 0 : index
    %c0_3 = arith.constant 0 : index
    %9 = vector.load %arg4[%c0_2, %c0_3] : memref<64x128xf32, #tpu.memory_space<vmem>>, vector<64x128xf32>
    %cst_4 = arith.constant dense<0.000000e+00> : vector<8x128xf32>
    %10 = tpu.matmul %8, %9, %cst_4 {dimension_numbers = #tpu.dot_dimension_numbers<[1], [0], [0], [1], [0, 0, 1, 1], [], []>} : vector<8x64xf32>, vector<64x128xf32>, vector<8x128xf32> -> vector<8x128xf32>
    %c0_5 = arith.constant 0 : index
    %c0_6 = arith.constant 0 : index
    %11 = vector.load %arg2[%c0_5, %c0_6] : memref<1x128xf32, #tpu.memory_space<vmem>>, vector<1x128xf32>
    %12 = vector.broadcast %11 : vector<1x128xf32> to vector<8x128xf32>
    %13 = arith.mulf %10, %12 : vector<8x128xf32>
    %c0_7 = arith.constant 0 : index
    %c0_8 = arith.constant 0 : index
    %14 = vector.load %arg5[%c0_7, %c0_8] : memref<8x128xf32, #tpu.memory_space<vmem>>, vector<8x128xf32>
    tpu.vector_store %arg5[%c0_7, %c0_8], %13 {strides = array<i32>} : memref<8x128xf32, #tpu.memory_space<vmem>>, vector<8x128xf32>,
    return
  }
  func.func @transform_0(%arg0: i32, %arg1: i32) -> (i32, i32) {
    %c0_i32 = arith.constant 0 : i32
    %c0_i32_0 = arith.constant 0 : i32
    return %c0_i32, %arg0 : i32, i32
  }
  func.func @transform_1(%arg0: i32, %arg1: i32) -> (i32, i32) {
    %c0_i32 = arith.constant 0 : i32
    %c0_i32_0 = arith.constant 0 : i32
    return %arg1, %c0_i32 : i32, i32
  }
  func.func @transform_2(%arg0: i32, %arg1: i32) -> (i32, i32) {
    %c0_i32 = arith.constant 0 : i32
    %c0_i32_0 = arith.constant 0 : i32
    return %c0_i32, %arg0 : i32, i32
  }
  func.func @transform_3(%arg0: i32, %arg1: i32) -> (i32, i32) {
    %c0_i32 = arith.constant 0 : i32
    return %arg1, %arg0 : i32, i32
  }
}

</mosaic_0001>

<bundles_post_ra>
// kernel: split_group_cosine_forward.1
= control target key start
LH: loop header
LB: loop body
LE: loop exit
PB: predicated region body
PF: predicated region fallthrough
CT: control target
= control target key end

     0   :  { %s1257_s0 = inlined_call_operand.vmem [shape: f32[1,512], index: 0, kind: input, shape index: {}]   ;;  %s1258_s1 = inlined_call_operand.hbm [shape: f32[16,64], index: 1, kind: input, shape index: {}]   ;;  %s1259_s2 = inlined_call_operand.hbm [shape: f32[64,512], index: 2, kind: input, shape index: {}]   ;;  %s1260_s3 = inlined_call_operand.hbm [shape: f32[16,512], index: 3, kind: output, shape index: {}]  }
   0x1   :  { %1268 = sst [smem:[#allocation18_spill]] %s1258_s1 }
   0x2   :  { %8 = vsyncpa [#allocation3], 0 }
   0x3   :  { %10 = vsyncpa [#allocation3 + $0x1], 0 }
   0x4   :  { %11 = vsyncpa [#allocation6], 0 }
   0x5   :  { %13 = vsyncpa [#allocation6 + $0x1], 0 }
   0x6   :  { %14 = vsyncpa [#allocation4], 0 }
   0x7   :  { %16 = vsyncpa [#allocation4 + $0x1], 0  ;;  %s922_s12 = smov 0   ;;  %s924_s13 = smov 0  }
   0x8   :  { %s926_s14 = smov 0   ;;  %s928_s15 = smov 0  }
   0x9   :  { %s930_s16 = smov 0   ;;  %s932_s17 = smov 0  }
   0xa   :  { %s934_s18 = smov 0   ;;  %s936_s19 = smov 0  }
   0xb   :  { %s938_s20 = smov 0   ;;  %s940_s21 = smov 0  }
   0xc   :  { %s942_s22 = smov 0   ;;  %s944_s23 = smov 0  }
   0xd   :  { %s946_s24 = smov 0   ;;  %s948_s25 = smov 0  }
   0xe LB: > { %1269 = sst [smem:[#allocation11_spill]] %s883_s23  ;;  %s483_s26 = sadd.s32 4294967295, %s891_s25   ;;  %s891_s25 = sphi %s948_s25, %s22_s25   ;;  %s887_s24 = sphi %s946_s24, %s1300_s24   ;;  %s883_s23 = sphi %s944_s23, %s1299_s23   ;;  %s879_s22 = sphi %s942_s22, %s1298_s22   ;;  %s875_s21 = sphi %s940_s21, %s1297_s21   ;;  %s871_s20 = sphi %s938_s20, %s1309_s20   ;;  %s867_s19 = sphi %s936_s19, %s1308_s19   ;;  %s863_s18 = sphi %s934_s18, %s1307_s18   ;;  %s859_s17 = sphi %s932_s17, %s1306_s17   ;;  %s855_s16 = sphi %s930_s16, %s1305_s16   ;;  %s851_s15 = sphi %s928_s15, %s1304_s15   ;;  %s847_s14 = sphi %s926_s14, %s1303_s14   ;;  %s843_s13 = sphi %s924_s13, %s1302_s13   ;;  %s839_s12 = sphi %s922_s12, %s1301_s12  }
   0xf   : > { %1270 = sst [smem:[#allocation12_spill]] %s887_s24  ;;  %s31_s28 = sadd.s32 1, %s883_s23 }
  0x10   : > { %s34_s29 = sadd.s32 1, %s887_s24  ;;  %p32_p0 = scmp.ge.s32.totalorder %s31_s28, 2 }
  0x11   : > { %s67_s30 = sadd.s32 1, %s871_s20  ;;  %p74_p1 = scmp.ne.s32.totalorder %s871_s20, %s867_s19 }
  0x12   : > { %p75_p2 = scmp.eq.s32.totalorder %s891_s25, 0  ;;  %s1311_s28 = smov (%p32_p0, %s31_s28), 0 }
  0x13   : > { %1271 = sst [smem:[#allocation13_spill]] %s1311_s28  ;;  %s1313_s29 = smov (!%p32_p0, %s34_s29), %s887_s24 }
  0x14   : > { %s64_s4 = ssub.s32 %s883_s23, %s1311_s28  ;;  %p1005_p3 = por %p75_p2, %p74_p1 }
  0x15   : > { %p36_p4 = scmp.ge.s32.totalorder %s1313_s29, 4  ;;  %p65_p5 = scmp.eq.s32.totalorder %s64_s4, 0 }
  0x16   : > { %p80_p6 = scmp.ne.s32.totalorder %s867_s19, %s863_s18  ;;  %p81_p7 = scmp.eq.s32.totalorder %s483_s26, 0 }
  0x17   : > { %s1315_s29 = smov (%p36_p4, %s1313_s29), 0  ;;  %s93_s9 = sadd.s32 1, %s859_s17 }
  0x18   : > { %1273 = sst [smem:[#allocation14_spill]] %s1315_s29  ;;  %p1017_p8 = por %p81_p7, %p80_p6 }
  0x19   : > { %s1015_s6 = scalar_select %p65_p5, %s871_s20, %s67_s30  }
  0x1a   : > { %s1275_s7 = scalar_select %p1017_p8, 1, 0 }
  0x1b   : > { %1274 = sst [smem:[#allocation15_spill]] %s1015_s6  ;;  %s90_s8 = ssub.s32 %s887_s24, %s1315_s29 }
  0x1c   : > { %p91_p9 = scmp.eq.s32.totalorder %s90_s8, 0  ;;  %p100_p10 = scmp.ne.s32.totalorder %s859_s17, %s855_s16 }
  0x1d   : > { %p106_p11 = scmp.ne.s32.totalorder %s855_s16, %s851_s15  ;;  %s118_s30 = sor.u32 %s90_s8, %s64_s4 }
  0x1e   : > { %s1029_s10 = scalar_select %p91_p9, %s859_s17, %s93_s9  }
  0x1f   : > { %p1033_p12 = por %p100_p10, %p75_p2  ;;  %p1037_p13 = por %p106_p11, %p81_p7 }
  0x20   : > { %1276 = sst [smem:[#allocation16_spill]] %s1029_s10  ;;  %s121_s27 = sadd.s32 1, %s847_s14 }
  0x21   : > { %s1278_s18 = scalar_select %p1037_p13, 1, 0 }
  0x22   : > { %p119_p0 = scmp.eq.s32.totalorder %s118_s30, 0  ;;  %p131_p1 = scmp.ne.s32.totalorder %s847_s14, %s843_s13 }
  0x23   : > { %p132_p4 = scmp.eq.s32.totalorder %s483_s26, 7  ;;  %p137_p5 = scmp.ne.s32.totalorder %s843_s13, %s839_s12 }
  0x24   : > { %s1049_s15 = scalar_select %p119_p0, %s847_s14, %s121_s27  }
  0x25   : > { %p1051_p2 = por %p132_p4, %p131_p1  ;;  %s1281_s29 = sadd.s32 4294967294, %s891_s25  }
  0x26   : > { %1279 = sst [smem:[#allocation17_spill]] %s1049_s15  ;;  %p138_p6 = scmp.eq.s32.totalorder %s1281_s29, 7 }
  0x27   : > { %s1280_s9 = scalar_select %p1051_p2, 1, 0 }
  0x28   : > { %p559_p7 = scmp.lt.s32.totalorder %s891_s25, 8  ;;  %p1058_p9 = por %p138_p6, %p137_p5 }
  0x29   : > { %s164_s8 = sand.u32 1, %s871_s20   ;;  %s488_s28 = sshll.u32 %s883_s23, 7 }
  0x2a   : > { %s1282_s4 = scalar_select %p1058_p9, 1, 0 }
  0x2b   : > { %s487_s30 = sshll.u32 %s164_s8, 3  ;;  %s1283_s1 = sld [smem:[#allocation18_spill]] }
  0x2c   : > { %s168_s27 = scalar_lea.vmem [#allocation2], %s487_s30  ;;  %p1073_p10 = pnand %p559_p7, %p1005_p3 }
  0x2d   : > { %s175_s15 = sshll.u32 %s168_s27, 4  ;;  %p1079_p11 = pnand %p559_p7, %p1033_p12  ;;  %s1069_s15 = int_to_ptr.vmem [resolvable:$true] %s175_s15 }
  0x2e   : > { %p683_p5 = pneg %p1073_p10 }
  0x31   : > { %s1067_s10 = scalar_lea.hbm %s1283_s1, %s488_s28  ;;  %s165_s28 = scalar_lea.sflag [#allocation3], %s164_s8 }
  0x32   : > { %s681_s30 = scalar_lea.hbm %s1067_s10, 128  ;;  %s686_s11 = scalar_lea.hbm %s1283_s1, 256 }
  0x33   : > { %p682_p4 = scmp.ne.s32.totalorder %s1067_s10, %s681_s30  ;;  %p687_p12 = scmp.lt.u32.totalorder %s1067_s10, %s1283_s1 }
  0x34   : > { %p688_p7 = scmp.lt.u32.totalorder %s686_s11, %s681_s30  ;;  %p690_p1 = scmp.lt.u32.totalorder %s681_s30, %s1067_s10 }
  0x35   : > { %p684_p3 = pnand %p683_p5, %p682_p4 }
  0x36   : > { %p689_p0 = por %p688_p7, %p687_p12 }
  0x37   : > { %p685_p6 = pneg %p684_p3 }
  0x38   : > { %p691_p9 = por %p690_p1, %p689_p0 }
  0x3a   : > { %p692_p2 = pnand %p691_p9, %p685_p6 }
  0x3c   : > { %695 = shalt.err (!%p692_p2)
}
  0x3d   : > { %s696_s8 = scalar_lea.vmem %s1069_s15, 128  ;;  %s893_s5 = smov [#allocation2]  }
  0x3e   : > { %p697_p4 = scmp.ne.s32.totalorder %s1069_s15, %s696_s8  ;;  %s701_s26 = sshll.u32 %s893_s5, 4  ;;  %s702_s26 = int_to_ptr.vmem [resolvable:$false] %s701_s26 }
  0x3f   : > { %s703_s23 = scalar_lea.vmem %s702_s26, 256  ;;  %p704_p8 = scmp.lt.s32.totalorder %s1069_s15, %s702_s26 }
  0x40   : > { %p699_p3 = pnand %p697_p4, %p683_p5  ;;  %p705_p12 = scmp.lt.s32.totalorder %s703_s23, %s696_s8 }
  0x42   : > { %p700_p13 = pneg %p699_p3  ;;  %p706_p7 = por %p705_p12, %p704_p8 }
  0x44   : > { %p707_p0 = pnand %p706_p7, %p700_p13 }
  0x46   : > { %710 = shalt.err (!%p707_p0)
}
  0x47   : > { %551 = dma.hbm_to_vmem [thread:$0]  (!%p1073_p10), %s1067_s10, 128, %s1069_s15, %s165_s28  }
  0x48   : > { %p1286_p2 = scmp.lt.s32.totalorder %s891_s25, 9  ;;  %p1287_p9 = scmp.ge.s32.totalorder %s891_s25, 1 }
  0x49   : > { %s182_s11 = sand.u32 1, %s859_s17   ;;  %s490_s27 = sshll.u32 %s887_s24, 7 }
  0x4a   : > { %p1114_p1 = pnand %p1287_p9, %p1286_p2  ;;  %s489_s8 = sshll.u32 %s182_s11, 6 }
  0x4b   : > { %s1123_s26 = scalar_lea.hbm %s1259_s2, %s490_s27  ;;  %s186_s23 = scalar_lea.vmem [#allocation5], %s489_s8 }
  0x4c   : > { %s192_s10 = sshll.u32 %s186_s23, 4  ;;  %s1127_s15 = scalar_lea.sflag [#allocation6], %s182_s11  ;;  %s1125_s10 = int_to_ptr.vmem [resolvable:$true] %s192_s10 }
  0x4d   : > { %s711_s28 = scalar_lea.hbm %s1123_s26, 1024  ;;  %p713_p13 = pneg %p1079_p11 }
  0x4e   : > { %p712_p8 = scmp.ne.s32.totalorder %s1123_s26, %s711_s28  ;;  %s716_s29 = scalar_lea.hbm %s1259_s2, 4096 }
  0x4f   : > { %p717_p6 = scmp.lt.u32.totalorder %s1123_s26, %s1259_s2  ;;  %p718_p4 = scmp.lt.u32.totalorder %s716_s29, %s711_s28 }
  0x50   : > { %p714_p10 = pnand %p713_p13, %p712_p8  ;;  %p720_p12 = scmp.lt.u32.totalorder %s711_s28, %s1123_s26 }
  0x51   : > { %p719_p3 = por %p718_p4, %p717_p6 }
  0x52   : > { %p715_p5 = pneg %p714_p10 }
  0x53   : > { %p721_p7 = por %p720_p12, %p719_p3 }
  0x55   : > { %p722_p0 = pnand %p721_p7, %p715_p5 }
  0x57   : > { %725 = shalt.err (!%p722_p0)
}
  0x58   : > { %s726_s11 = scalar_lea.vmem %s1125_s10, 1024  ;;  %s894_s8 = smov [#allocation5]  }
  0x59   : > { %p727_p2 = scmp.ne.s32.totalorder %s1125_s10, %s726_s11  ;;  %s731_s23 = sshll.u32 %s894_s8, 4  ;;  %s732_s23 = int_to_ptr.vmem [resolvable:$false] %s731_s23 }
  0x5a   : > { %s733_s1 = scalar_lea.vmem %s732_s23, 2048  ;;  %p734_p10 = scmp.lt.s32.totalorder %s1125_s10, %s732_s23 }
  0x5b   : > { %p729_p9 = pnand %p727_p2, %p713_p13  ;;  %p735_p6 = scmp.lt.s32.totalorder %s733_s1, %s726_s11 }
  0x5d   : > { %p730_p8 = pneg %p729_p9  ;;  %p736_p4 = por %p735_p6, %p734_p10 }
  0x5f   : > { %p737_p3 = pnand %p736_p4, %p730_p8 }
  0x61   : > { %740 = shalt.err (!%p737_p3)
}
  0x62   : > { %s895_s24 = smov 512   ;;  %s896_s28 = smov 128  }
  0x63   : > { %s897_s27 = smov 8   ;;  %204 = sbr.rel (%p1114_p1) target bundleno = 500 (0x1f4), region = 32 }
  0x64   : > { %554 = dma.hbm_to_vmem [thread:$0]  (!%p1079_p11), %s1123_s26, 1024, %s1125_s10, %s1127_s15, %s895_s24, %s896_s28, %s897_s27  }
  0x65   : > { %s206_s5 = sand.u32 (!%p1114_p1), 1, %s867_s19   ;;  %p1289_p13 = scmp.ne.s32.totalorder (!%p1114_p1), %s1275_s7, 0 }
  0x66   : > { %s492_s29 = sshll.u32 (!%p1114_p1), %s206_s5, 3  ;;  %s207_s11 = scalar_lea.sflag (!%p1114_p1), [#allocation3], %s206_s5 }
  0x67   : > { %s210_s8 = scalar_lea.vmem (!%p1114_p1), [#allocation2], %s492_s29 }
  0x6a   : > { %826 = dma.done.wait (%p1289_p13), %s207_s11, 128  }
  0x6b   : > { %828 = vsyncadd (%p1289_p13), %s207_s11, 4294967168  ;;  %s215_s23 = sand.u32 1, %s855_s16   ;;  %p1290_p11 = scmp.ne.s32.totalorder %s1278_s18, 0 }
  0x6c   : > { %s493_s1 = sshll.u32 %s215_s23, 6  ;;  %s216_s6 = scalar_lea.sflag [#allocation6], %s215_s23 }
  0x6d   : > { %s219_s26 = scalar_lea.vmem [#allocation5], %s493_s1 }
  0x6e   : > { %830 = dma.done.wait (%p1290_p11), %s216_s6, 1024  }
  0x6f   : > { %832 = vsyncadd (%p1290_p11), %s216_s6, 4294966272  ;;  %v253_v0 = vld [vmem:[%s210_s8] sm:$0xff]  ;;  %vm255_vm0 = vcmask 523264   ;;  %v262_v3 = vld [vmem:[%s219_s26] sm:$0xff]  ;;  %v898_v6 = vmov 0.0|0.0   ;;  %vm899_vm1 = vmmov 0  }
  0x70   : > { %v254_v1 = vmul.f32 %v253_v0, %v253_v0  ;;  %v263_v4 = vld [vmem:[%s219_s26 + $0x8] sm:$0xff]  ;;  %530 = vmatprep.subr.bf16.mxu0 %v898_v6  ;;  %v264_v7 = vld [vmem:[%s219_s26 + $0x10] sm:$0xff]  ;;  %v265_v8 = vld [vmem:[%s219_s26 + $0x18] sm:$0xff]  ;;  %v900_v12 = vmov 0.0   ;;  %s247_s7 = sand.u32 1, %s843_s13   ;;  %p250_p1 = scmp.lt.s32.totalorder %s879_s22, 3 }
  0x71   : > { %v531_v5 = vpack.c.bf16 %v263_v4, %v262_v3  ;;  %v534_v9 = vpack.c.bf16 %v265_v8, %v264_v7  ;;  %v266_v10 = vld [vmem:[%s219_s26 + $0x20] sm:$0xff]  ;;  %v267_v11 = vld [vmem:[%s219_s26 + $0x28] sm:$0xff]  ;;  %527 = vmatprep.mubr.msk.f32.mxu0 %vm899_vm1, %v900_v12  ;;  %v268_v14 = vld [vmem:[%s219_s26 + $0x30] sm:$0xff]  ;;  %s494_s18 = sshll.u32 %s247_s7, 3  ;;  %s498_s10 = sshll.u32 %s875_s21, 2 }
  0x72   : > { %v256_v2 = vsel %vm255_vm0, %v254_v1, 0.0  ;;  %v537_v13 = vpack.c.bf16 %v267_v11, %v266_v10  ;;  %v269_v15 = vld [vmem:[%s219_s26 + $0x38] sm:$0xff]  ;;  %s251_s30 = scalar_select %p250_p1, %s879_s22, 3 }
  0x73   : > { %257 = vadd.xlane.f32.xlu0 %v256_v2  ;;  %532 = vmatpush3.bf16.msra.mxu0 %v531_v5  ;;  %v540_v16 = vpack.c.bf16 %v269_v15, %v268_v14  ;;  %s364_s27 = sadd.s32 %s879_s22, %s498_s10  ;;  %s249_s29 = scalar_lea.vmem [#allocation7], %s494_s18 }
  0x74   : > { %533 = vmatprep.subr.bf16.mxu0 %v898_v6  ;;  %s252_s28 = scalar_lea.vmem %s1257_s0, %s251_s30  ;;  %s499_s5 = sshll.u32 %s364_s27, 7 }
  0x75   : > { %v496_v21 = vld [vmem:[%s252_s28] ss:$0 sm:$0xff]  ;;  %s368_s11 = sshll.u32 %s249_s29, 4  ;;  %s1180_s1 = scalar_lea.hbm %s1260_s3, %s499_s5  ;;  %s1182_s11 = int_to_ptr.vmem [resolvable:$true] %s368_s11 }
  0x76   : > { %s353_s21 = scalar_lea.sflag [#allocation4], %s247_s7  ;;  %s741_s22 = scalar_lea.vmem %s1182_s11, 128 }
  0x77   : > { %535 = vmatpush3.bf16.msra.mxu0 %v534_v9  ;;  %p742_p5 = scmp.ne.s32.totalorder %s1182_s11, %s741_s22  ;;  %p1291_p12 = scmp.ne.s32.totalorder %s1280_s9, 0 }
  0x78   : > { %536 = vmatprep.subr.bf16.mxu0 %v898_v6  ;;  %s901_s6 = smov [#allocation7]  }
  0x79   : > { %p743_p7 = pnand %p742_p5, %p1291_p12  ;;  %s745_s26 = sshll.u32 %s901_s6, 4  ;;  %s746_s26 = int_to_ptr.vmem [resolvable:$false] %s745_s26 }
  0x7a   : > { %s747_s18 = scalar_lea.vmem %s746_s26, 256  ;;  %p748_p2 = scmp.lt.s32.totalorder %s1182_s11, %s746_s26 }
  0x7b   : > { %538 = vmatpush3.bf16.msra.mxu0 %v537_v13  ;;  %p744_p0 = pneg %p743_p7  ;;  %p749_p9 = scmp.lt.s32.totalorder %s747_s18, %s741_s22 }
  0x7c   : > { %539 = vmatprep.subr.bf16.mxu0 %v898_v6 }
  0x7d   : > { %p750_p8 = por %p749_p9, %p748_p2 }
  0x7f   : > { %541 = vmatpush3.bf16.msra.mxu0 %v540_v16  ;;  %p751_p10 = pnand %p750_p8, %p744_p0 }
 0x100   : > { %v258_v17 = vpop.xlane.xlu0 %257 }
 0x101   : > { %v259_v18 = vmax.f32 %v258_v17, 1e-24 }
 0x103   : > { %679 = vrsqrt.f32 %v259_v18 }
 0x10d   : > { %v680_v19 = vpop.eup %679 }
 0x10e   : > { %v261_v20 = vmul.f32 %v680_v19, %v253_v0 }
 0x110   : > { %528 = vmatmul.mubr.msk.f32.vlgmr.msra.gmra.mrb[0].mxu0 %vm255_vm0, %v261_v20 }
 0x1e3   : > { %v339_v22 = vpop.f32.mrb[0].mxu0 }
 0x1e4   : > { %v350_v23 = vmul.f32 %v496_v21, %v339_v22  ;;  %v529_v24 = vpop.f32.mrb[1].mxu0 }
 0x1e6   : > { %351 = vst [vmem:[%s249_s29] sm:$0xff] %v350_v23 }
 0x1e7   : > { %754 = shalt.err (!%p751_p10)
}
 0x1e8   : > { %s755_s7 = scalar_lea.hbm %s1180_s1, 128  ;;  %s759_s15 = scalar_lea.hbm %s1260_s3, 1024 }
 0x1e9   : > { %p756_p6 = scmp.ne.s32.totalorder %s1180_s1, %s755_s7  ;;  %p760_p13 = scmp.lt.u32.totalorder %s1180_s1, %s1260_s3 }
 0x1ea   : > { %p761_p11 = scmp.lt.u32.totalorder %s759_s15, %s755_s7  ;;  %p763_p5 = scmp.lt.u32.totalorder %s755_s7, %s1180_s1 }
 0x1eb   : > { %p757_p4 = pnand %p756_p6, %p1291_p12 }
 0x1ec   : > { %p762_p1 = por %p761_p11, %p760_p13 }
 0x1ed   : > { %p758_p3 = pneg %p757_p4 }
 0x1ee   : > { %p764_p7 = por %p763_p5, %p762_p1 }
 0x1f0   : > { %p765_p0 = pnand %p764_p7, %p758_p3 }
 0x1f2   : > { %768 = shalt.err (!%p765_p0)
}
 0x1f3   : > { %546 = dma.vmem_to_hbm [thread:$0]  (%p1291_p12), %s1182_s11, 128, %s1180_s1, %s353_s21  }
 0x1f4 PF: > { %p560_p2 = scmp.ge.s32.totalorder %s891_s25, 2  ;;  %s380_s27 = sand.u32 1, %s839_s12  }
 0x1f5   : > { %p1292_p9 = scmp.ne.s32.totalorder %s1282_s4, 0  ;;  %s381_s5 = scalar_lea.sflag [#allocation4], %s380_s27 }
 0x1f7   : > { %p556_p8 = pnand %p560_p2, %p1292_p9 }
 0x1f9   : > { %834 = dma.done.wait (!%p556_p8), %s381_s5, 128  }
 0x1fa   : > { %836 = vsyncadd (!%p556_p8), %s381_s5, 4294967168  ;;  %s22_s25 = sadd.s32 1, %s891_s25   ;;  %s1294_s9 = sld [smem:[#allocation17_spill]] }
 0x1fb   : > { %p1210_p10 = scmp.ge.s32.totalorder %s22_s25, 10   ;;  %s1295_s11 = sld [smem:[#allocation16_spill]] }
 0x1fc   : > { %s1296_s8 = sld [smem:[#allocation15_spill]]  ;;  %s1297_s21 = sld [smem:[#allocation11_spill]] }
 0x1fd   : > { %s1298_s22 = sld [smem:[#allocation12_spill]]  ;;  %s1299_s23 = sld [smem:[#allocation13_spill]] }
 0x1fe   : > { %s1300_s24 = sld [smem:[#allocation14_spill]]  ;;  %s1301_s12 = smov %s843_s13 }
 0x1ff   : > { %s1302_s13 = smov %s847_s14  ;;  %s1304_s15 = smov %s855_s16 }
 0x200   : > { %s1303_s14 = smov %s1294_s9  ;;  %s1305_s16 = smov %s859_s17 }
 0x201   : > { %s1306_s17 = smov %s1295_s11  ;;  %s1307_s18 = smov %s867_s19 }
 0x202   : > { %s1308_s19 = smov %s871_s20  ;;  %s1309_s20 = smov %s1296_s8 }
 0x203   :  { %21 = sbr.rel (!%p1210_p10) target bundleno = 14 (0xe), region = 93 }
 0x20a   :  { %386 = vsyncpa [#allocation3], 1 }
 0x20b   :  { %388 = vsyncpa [#allocation3 + $0x1], 1 }
 0x20c   :  { %389 = vsyncpa [#allocation6], 1 }
 0x20d   :  { %391 = vsyncpa [#allocation6 + $0x1], 1 }
 0x20e   :  { %392 = vsyncpa [#allocation4], 1 }
 0x20f   :  { %394 = vsyncpa [#allocation4 + $0x1], 1 }

</bundles_post_ra>
